<compile_context>
chip_gen: v5e
topology: v5e:2x2
jax: 0.10.0
libtpu: 0.0.40
codegen_flags: <defaults>
</compile_context>

<pallas_src>
import functools
import math

import jax
import jax.numpy as jnp
from jax import lax
from jax.experimental import pallas as pl
from jax.experimental.pallas import tpu as pltpu


def _round_up(n, m):
    return ((n + m - 1) // m) * m


def _decoder_kernel(x_ref, wqkv_ref, wff_ref, b_ref, o_ref, *,
                    dp, tq, s_valid, s_pad, scale, single_tile):
    """Fused decoder forward for one query-row tile.

    x_ref    : [s_pad, dp]  padded input sequence (full, needed for K/V)
    wqkv_ref : [dp, 3*dp]   fused, pre-transposed, zero-padded  Wq | Wk | Wv
    wff_ref  : [dp, 2*dp]   fused, pre-transposed, zero-padded  W1 | W2
    b_ref    : [8, 3*dp]    row0 = bq|bk|bv, row1 = b1 (first dp), row2 = b2 (first dp)
    o_ref    : [tq, dp]     output tile for this grid step
    """
    x = x_ref[...]                                   # [s_pad, dp] f32
    wqkv = wqkv_ref[...]                             # [dp, 3*dp]
    b = b_ref[...]                                   # [8, 3*dp]
    b_qkv = b[0:1, :]
    b_ff1 = b[1:2, :dp]
    b_ff2 = b[2:3, :dp]

    if single_tile:
        # Whole sequence in one grid step: single fused QKV push
        # ([s, dp] x [dp, 3*dp]) fills 3*dp MXU output lanes at once.
        qkv = jnp.dot(x, wqkv, preferred_element_type=jnp.float32) + b_qkv
        q = qkv[:, :dp]
        k = qkv[:, dp:2 * dp]
        v = qkv[:, 2 * dp:]
    else:
        # Query rows for this tile; K/V still need the full sequence (K|V fused).
        start = pl.multiple_of(pl.program_id(0) * tq, 8)
        x_q = x_ref[pl.ds(start, tq), :]
        q = jnp.dot(x_q, wqkv[:, :dp],
                    preferred_element_type=jnp.float32) + b_qkv[:, :dp]
        kv = jnp.dot(x, wqkv[:, dp:],
                     preferred_element_type=jnp.float32) + b_qkv[:, dp:]
        k = kv[:, :dp]
        v = kv[:, dp:]

    if s_pad > s_valid:
        # Zero padded key rows so they contribute nothing (scores are additive —
        # there is no softmax in the reference).
        row = lax.broadcasted_iota(jnp.int32, (s_pad, 1), 0)
        k = jnp.where(row < s_valid, k, 0.0)

    # Scaled scores: contract the last dims of q and k so the transpose is
    # absorbed into the MXU operand feed (no XLU vxpose, no [dp, s] temporary).
    attn = lax.dot_general(q, k, dimension_numbers=(((1,), (1,)), ((), ())),
                           preferred_element_type=jnp.float32) * scale   # [tq, s_pad]
    # NOTE: reference applies NO softmax; dropout is identity in eval mode.
    ctx = jnp.dot(attn, v, preferred_element_type=jnp.float32)           # [tq, dp]

    # Feed-forward, both layers back-to-back in VMEM (no HBM intermediate).
    wff = wff_ref[...]
    h = jnp.dot(ctx, wff[:, :dp], preferred_element_type=jnp.float32) + b_ff1
    out = jnp.dot(h, wff[:, dp:], preferred_element_type=jnp.float32) + b_ff2

    o_ref[...] = out.astype(o_ref.dtype)


def prepare_params(params, d):
    """One-time weight prep, hoisted out of the per-call path:
    transpose nn.Linear (out,in)->(in,out), zero-pad D -> Dp (lane-dense 128),
    fuse Q|K|V and FF1|FF2, and pack all 5 biases into a single (8, 3*Dp) tile."""
    dp = _round_up(d, 128)

    def wt(name):
        w = jnp.asarray(params[name + "_w"], jnp.float32).T          # [d, d] (in, out)
        return jnp.pad(w, ((0, dp - d), (0, dp - d)))

    def bias_row(name):
        b = jnp.asarray(params[name + "_b"], jnp.float32)
        return jnp.pad(b, (0, dp - d))

    wqkv = jnp.concatenate([wt("q"), wt("k"), wt("v")], axis=1)       # [dp, 3*dp]
    wff = jnp.concatenate([wt("ff1"), wt("ff2")], axis=1)             # [dp, 2*dp]

    bias = jnp.zeros((8, 3 * dp), jnp.float32)
    bias = bias.at[0, :].set(
        jnp.concatenate([bias_row("q"), bias_row("k"), bias_row("v")]))
    bias = bias.at[1, :dp].set(bias_row("ff1"))
    bias = bias.at[2, :dp].set(bias_row("ff2"))

    return {"wqkv": wqkv, "wff": wff, "bias": bias}


def transformer_decoder(x, prepped):
    """x: [S, D] float32. prepped: output of prepare_params (fused/padded weights)."""
    s, d = x.shape
    dp = prepped["wqkv"].shape[0]

    # Query-row tiling: one tile per grid step, marked "parallel" so both v7x
    # TensorCores get work at large S. Degenerates to grid=(1,) at small S.
    s8 = _round_up(s, 8)
    if s8 <= 256:
        tq, s_pad = s8, s8
    else:
        tq = 256
        s_pad = _round_up(s, tq)
    num_tiles = s_pad // tq
    single_tile = num_tiles == 1

    x_p = jnp.pad(x.astype(jnp.float32), ((0, s_pad - s), (0, dp - d)))

    kernel = functools.partial(
        _decoder_kernel, dp=dp, tq=tq, s_valid=s, s_pad=s_pad,
        scale=1.0 / math.sqrt(d), single_tile=single_tile)

    flops = int(2 * s_pad * dp * 3 * dp                     # QKV projections
                + num_tiles * (2 * tq * s_pad * dp * 2)     # scores + context
                + 2 * s_pad * dp * dp * 2)                  # feed-forward
    bytes_accessed = int(4 * (num_tiles * s_pad * dp + dp * 3 * dp
                              + dp * 2 * dp + 8 * 3 * dp + s_pad * dp))

    out = pl.pallas_call(
        kernel,
        out_shape=jax.ShapeDtypeStruct((s_pad, dp), jnp.float32),
        grid_spec=pltpu.PrefetchScalarGridSpec(
            num_scalar_prefetch=0,
            grid=(num_tiles,),
            in_specs=[
                pl.BlockSpec((s_pad, dp), lambda i: (0, 0)),     # x (full, for K/V)
                pl.BlockSpec((dp, 3 * dp), lambda i: (0, 0)),    # fused Wq|Wk|Wv
                pl.BlockSpec((dp, 2 * dp), lambda i: (0, 0)),    # fused W1|W2
                pl.BlockSpec((8, 3 * dp), lambda i: (0, 0)),     # packed biases
            ],
            out_specs=pl.BlockSpec((tq, dp), lambda i: (i, 0)),
        ),
        compiler_params=pltpu.CompilerParams(
            dimension_semantics=("parallel",)),
        cost_estimate=pl.CostEstimate(
            flops=flops, transcendentals=0, bytes_accessed=bytes_accessed),
    )(x_p, prepped["wqkv"], prepped["wff"], prepped["bias"])

    # Strip lane/sublane padding (padded output lanes are exactly zero).
    return out[:s, :d]

# TODO(synk): for realistic D (>=1024) / S (>=4096), switch the K/V side to a
# flash-style loop over K-tiles with BlockSpec-tiled weight panels sized against
# v7x's 64 MiB VMEM, instead of keeping the full [S, Dp] sequence resident.


def init_params(key, dim):
    """Deterministic init mimicking nn.Linear default (U[-1/sqrt(fan_in), 1/sqrt(fan_in)])."""
    names = ["q", "k", "v", "ff1", "ff2"]
    params = {}
    bound = 1.0 / math.sqrt(dim)
    keys = jax.random.split(key, 2 * len(names))
    for i, name in enumerate(names):
        params[name + "_w"] = jax.random.uniform(
            keys[2 * i], (dim, dim), jnp.float32, -bound, bound)   # (out, in)
        params[name + "_b"] = jax.random.uniform(
            keys[2 * i + 1], (dim,), jnp.float32, -bound, bound)
    return params


def reference_forward(x, params):
    """Pure-JAX reference replicating the PyTorch semantics (eval mode)."""
    D = x.shape[-1]

    def lin(h, name):
        return h @ params[name + "_w"].T + params[name + "_b"]

    q, k, v = lin(x, "q"), lin(x, "k"), lin(x, "v")
    attn = (q @ k.T) / math.sqrt(D)
    ctx = attn @ v
    return lin(lin(ctx, "ff1"), "ff2")


if __name__ == "__main__":
    S, D = 8, 32            # seq=8, hidden(output_dim)=32
    key = jax.random.PRNGKey(0)
    kx, kp = jax.random.split(key)
    x = jax.random.normal(kx, (S, D), jnp.float32)
    params = init_params(kp, D)

    prepped = prepare_params(params, D)      # one-time prep, hoisted out of the forward

    out = transformer_decoder(x, prepped)
    out = jax.block_until_ready(out)

    ref = reference_forward(x, params)
    assert out.shape == (S, D)
    assert jnp.allclose(out, ref, atol=1e-4, rtol=1e-4), "mismatch vs pure-JAX reference"

    print("KERNEL_OK")
</pallas_src>

<mosaic_0001>
module attributes {stable_mosaic.version = 11 : i64} {
  func.func @_decoder_kernel(%arg0: i32, %arg1: memref<8x128xf32, #tpu.memory_space<vmem>>, %arg2: memref<128x384xf32, #tpu.memory_space<vmem>>, %arg3: memref<128x256xf32, #tpu.memory_space<vmem>>, %arg4: memref<8x384xf32, #tpu.memory_space<vmem>>, %arg5: memref<8x128xf32, #tpu.memory_space<vmem>>) attributes {dimension_semantics = [#tpu.dimension_semantics<parallel>], iteration_bounds = array<i64: 1>, scalar_prefetch = 0 : i64, scratch_operands = 0 : i64, tpu.core_type = #tpu.core_type<tc>, window_params = [{pipeline_mode = #tpu.pipeline_mode<synchronous>, transform_indices = @transform_0, window_bounds = array<i64: 8, 128>}, {pipeline_mode = #tpu.pipeline_mode<synchronous>, transform_indices = @transform_1, window_bounds = array<i64: 128, 384>}, {pipeline_mode = #tpu.pipeline_mode<synchronous>, transform_indices = @transform_2, window_bounds = array<i64: 128, 256>}, {pipeline_mode = #tpu.pipeline_mode<synchronous>, transform_indices = @transform_3, window_bounds = array<i64: 8, 384>}, {transform_indices = @transform_4, window_bounds = array<i64: 8, 128>}]} {
    %c0 = arith.constant 0 : index
    %c0_0 = arith.constant 0 : index
    %0 = vector.load %arg1[%c0, %c0_0] : memref<8x128xf32, #tpu.memory_space<vmem>>, vector<8x128xf32>
    %c0_1 = arith.constant 0 : index
    %c0_2 = arith.constant 0 : index
    %1 = vector.load %arg2[%c0_1, %c0_2] : memref<128x384xf32, #tpu.memory_space<vmem>>, vector<128x384xf32>
    %c0_3 = arith.constant 0 : index
    %c0_4 = arith.constant 0 : index
    %2 = vector.load %arg4[%c0_3, %c0_4] : memref<8x384xf32, #tpu.memory_space<vmem>>, vector<8x384xf32>
    %3 = vector.extract_strided_slice %2 {offsets = [0, 0], sizes = [1, 384], strides = [1, 1]} : vector<8x384xf32> to vector<1x384xf32>
    %4 = vector.extract_strided_slice %2 {offsets = [1, 0], sizes = [1, 128], strides = [1, 1]} : vector<8x384xf32> to vector<1x128xf32>
    %5 = vector.extract_strided_slice %2 {offsets = [2, 0], sizes = [1, 128], strides = [1, 1]} : vector<8x384xf32> to vector<1x128xf32>
    %cst = arith.constant dense<0.000000e+00> : vector<8x384xf32>
    %6 = tpu.matmul %0, %1, %cst {dimension_numbers = #tpu.dot_dimension_numbers<[1], [0], [0], [1], [0, 0, 1, 1], [], []>} : vector<8x128xf32>, vector<128x384xf32>, vector<8x384xf32> -> vector<8x384xf32>
    %7 = vector.broadcast %3 : vector<1x384xf32> to vector<8x384xf32>
    %8 = arith.addf %6, %7 : vector<8x384xf32>
    %9 = vector.extract_strided_slice %8 {offsets = [0, 0], sizes = [8, 128], strides = [1, 1]} : vector<8x384xf32> to vector<8x128xf32>
    %10 = vector.extract_strided_slice %8 {offsets = [0, 128], sizes = [8, 128], strides = [1, 1]} : vector<8x384xf32> to vector<8x128xf32>
    %11 = vector.extract_strided_slice %8 {offsets = [0, 256], sizes = [8, 128], strides = [1, 1]} : vector<8x384xf32> to vector<8x128xf32>
    %cst_5 = arith.constant dense<0.000000e+00> : vector<8x8xf32>
    %12 = tpu.matmul %9, %10, %cst_5 {dimension_numbers = #tpu.dot_dimension_numbers<[1], [1], [0], [0], [0, 0, 1, 0], [], []>} : vector<8x128xf32>, vector<8x128xf32>, vector<8x8xf32> -> vector<8x8xf32>
    %cst_6 = arith.constant 0.176776692 : f32
    %13 = vector.broadcast %cst_6 : f32 to vector<8x8xf32>
    %14 = arith.mulf %12, %13 : vector<8x8xf32>
    %cst_7 = arith.constant dense<0.000000e+00> : vector<8x128xf32>
    %15 = tpu.matmul %14, %11, %cst_7 {dimension_numbers = #tpu.dot_dimension_numbers<[1], [0], [0], [1], [0, 0, 1, 1], [], []>} : vector<8x8xf32>, vector<8x128xf32>, vector<8x128xf32> -> vector<8x128xf32>
    %c0_8 = arith.constant 0 : index
    %c0_9 = arith.constant 0 : index
    %16 = vector.load %arg3[%c0_8, %c0_9] : memref<128x256xf32, #tpu.memory_space<vmem>>, vector<128x256xf32>
    %17 = vector.extract_strided_slice %16 {offsets = [0, 0], sizes = [128, 128], strides = [1, 1]} : vector<128x256xf32> to vector<128x128xf32>
    %cst_10 = arith.constant dense<0.000000e+00> : vector<8x128xf32>
    %18 = tpu.matmul %15, %17, %cst_10 {dimension_numbers = #tpu.dot_dimension_numbers<[1], [0], [0], [1], [0, 0, 1, 1], [], []>} : vector<8x128xf32>, vector<128x128xf32>, vector<8x128xf32> -> vector<8x128xf32>
    %19 = vector.broadcast %4 : vector<1x128xf32> to vector<8x128xf32>
    %20 = arith.addf %18, %19 : vector<8x128xf32>
    %21 = vector.extract_strided_slice %16 {offsets = [0, 128], sizes = [128, 128], strides = [1, 1]} : vector<128x256xf32> to vector<128x128xf32>
    %cst_11 = arith.constant dense<0.000000e+00> : vector<8x128xf32>
    %22 = tpu.matmul %20, %21, %cst_11 {dimension_numbers = #tpu.dot_dimension_numbers<[1], [0], [0], [1], [0, 0, 1, 1], [], []>} : vector<8x128xf32>, vector<128x128xf32>, vector<8x128xf32> -> vector<8x128xf32>
    %23 = vector.broadcast %5 : vector<1x128xf32> to vector<8x128xf32>
    %24 = arith.addf %22, %23 : vector<8x128xf32>
    %c0_12 = arith.constant 0 : index
    %c0_13 = arith.constant 0 : index
    %25 = vector.load %arg5[%c0_12, %c0_13] : memref<8x128xf32, #tpu.memory_space<vmem>>, vector<8x128xf32>
    tpu.vector_store %arg5[%c0_12, %c0_13], %24 {strides = array<i32>} : memref<8x128xf32, #tpu.memory_space<vmem>>, vector<8x128xf32>,
    return
  }
  func.func @transform_0(%arg0: i32) -> (i32, i32) {
    %c0_i32 = arith.constant 0 : i32
    %c0_i32_0 = arith.constant 0 : i32
    %c0_i32_1 = arith.constant 0 : i32
    return %c0_i32, %c0_i32_0 : i32, i32
  }
  func.func @transform_1(%arg0: i32) -> (i32, i32) {
    %c0_i32 = arith.constant 0 : i32
    %c0_i32_0 = arith.constant 0 : i32
    %c0_i32_1 = arith.constant 0 : i32
    return %c0_i32, %c0_i32_0 : i32, i32
  }
  func.func @transform_2(%arg0: i32) -> (i32, i32) {
    %c0_i32 = arith.constant 0 : i32
    %c0_i32_0 = arith.constant 0 : i32
    %c0_i32_1 = arith.constant 0 : i32
    return %c0_i32, %c0_i32_0 : i32, i32
  }
  func.func @transform_3(%arg0: i32) -> (i32, i32) {
    %c0_i32 = arith.constant 0 : i32
    %c0_i32_0 = arith.constant 0 : i32
    %c0_i32_1 = arith.constant 0 : i32
    return %c0_i32, %c0_i32_0 : i32, i32
  }
  func.func @transform_4(%arg0: i32) -> (i32, i32) {
    %c0_i32 = arith.constant 0 : i32
    %c0_i32_0 = arith.constant 0 : i32
    return %arg0, %c0_i32 : i32, i32
  }
}

</mosaic_0001>

<bundles_post_ra>
// kernel: tpu_custom_call.1
= control target key start
LH: loop header
LB: loop body
LE: loop exit
PB: predicated region body
PF: predicated region fallthrough
CT: control target
= control target key end

     0   :  { %9 = vsyncpa [#allocation3], 0  ;;  %s523_s0 = inlined_call_operand.hbm [shape: f32[8,128], index: 0, kind: input, shape index: {}]   ;;  %s524_s1 = inlined_call_operand.hbm [shape: f32[128,384], index: 1, kind: input, shape index: {}]   ;;  %s525_s2 = inlined_call_operand.hbm [shape: f32[128,256], index: 2, kind: input, shape index: {}]   ;;  %s526_s3 = inlined_call_operand.hbm [shape: f32[8,384], index: 3, kind: input, shape index: {}]   ;;  %s527_s4 = inlined_call_operand.hbm [shape: f32[8,128], index: 4, kind: output, shape index: {}]  }
   0x1   :  { %10 = vsyncpa [#allocation6], 0 }
   0x2   :  { %11 = vsyncpa [#allocation9], 0  ;;  %s28_s17 = sshll.u32 %s524_s1, 4  ;;  %s29_s17 = int_to_ptr.hbm [resolvable:$true] %s28_s17 }
   0x3   :  { %12 = vsyncpa [#allocation4], 0  ;;  %s469_s18 = smov [#allocation5]   ;;  %s18_s22 = sshll.u32 %s523_s0, 4  ;;  %s19_s22 = int_to_ptr.hbm [resolvable:$true] %s18_s22 }
   0x4   :  { %s30_s19 = sshll.u32 %s469_s18, 4  ;;  %s470_s23 = smov 384   ;;  %s31_s19 = int_to_ptr.vmem [resolvable:$true] %s30_s19 }
   0x5   :  { %s471_s24 = smov 24   ;;  %s472_s25 = smov [#allocation2]  }
   0x6   :  { %36 = dma.hbm_to_vmem [thread:$0]  %s29_s17, 6144, %s31_s19, [#allocation6], %s470_s23, %s470_s23, %s471_s24  }
   0x7   :  { %s20_s26 = sshll.u32 %s472_s25, 4  ;;  %s41_s29 = sshll.u32 %s525_s2, 4  ;;  %s21_s26 = int_to_ptr.vmem [resolvable:$true] %s20_s26  ;;  %s42_s29 = int_to_ptr.hbm [resolvable:$true] %s41_s29 }
   0x8   :  { %23 = dma.hbm_to_vmem [thread:$0]  %s19_s22, 128, %s21_s26, [#allocation3]  }
   0x9   :  { %s473_s1 = smov [#allocation7]   ;;  %s55_s0 = sshll.u32 %s526_s3, 4  ;;  %s56_s0 = int_to_ptr.hbm [resolvable:$true] %s55_s0 }
   0xa   :  { %s43_s30 = sshll.u32 %s473_s1, 4  ;;  %s474_s7 = smov 256   ;;  %s44_s30 = int_to_ptr.vmem [resolvable:$true] %s43_s30 }
   0xb   :  { %s475_s8 = smov 16   ;;  %s476_s9 = smov [#allocation8]  }
   0xc   :  { %49 = dma.hbm_to_vmem [thread:$0]  %s42_s29, 4096, %s44_s30, [#allocation6], %s474_s7, %s474_s7, %s475_s8  }
   0xd   :  { %s57_s10 = sshll.u32 %s476_s9, 4  ;;  %s58_s10 = int_to_ptr.vmem [resolvable:$true] %s57_s10 }
   0xe   :  { %60 = dma.hbm_to_vmem [thread:$0]  %s56_s0, 384, %s58_s10, [#allocation9]  }
   0xf   :  { %461 = dma.done.wait [#allocation3], 128  }
  0x10   :  { %462 = vsyncadd [#allocation3], 4294967168 }
  0x11   :  { %463 = dma.done.wait [#allocation6], 10240  }
  0x12   :  { %464 = vsyncadd [#allocation6], 4294957056 }
  0x13   :  { %465 = dma.done.wait [#allocation9], 384  }
  0x14   :  { %466 = vsyncadd [#allocation9], 4294966912  ;;  %v124_v0 = vld [vmem:[#allocation5 + $0x170] sm:$0xff]  ;;  %v121_v1 = vld [vmem:[#allocation5 + $0x158] sm:$0xff]  ;;  %vm213_vm0 = vcmask 64512   ;;  %s477_s2 = smov [#allocation10]  }
  0x15   :  { %v123_v2 = vld [vmem:[#allocation5 + $0x168] sm:$0xff]  ;;  %152 = vmatpush.msra.mxu1 %v124_v0  ;;  %v120_v3 = vld [vmem:[#allocation5 + $0x150] sm:$0xff]  ;;  %v118_v4 = vld [vmem:[#allocation5 + $0x140] sm:$0xff]  ;;  %s317_s3 = sshll.u32 %s477_s2, 4  ;;  %s319_s13 = sshll.u32 %s527_s4, 4  ;;  %s318_s3 = int_to_ptr.vmem [resolvable:$true] %s317_s3  ;;  %s320_s13 = int_to_ptr.hbm [resolvable:$true] %s319_s13 }
  0x16   :  { %132 = vmatpush.msra.mxu0 %v123_v2  ;;  %v117_v5 = vld [vmem:[#allocation5 + $0x138] sm:$0xff]  ;;  %v115_v6 = vld [vmem:[#allocation5 + $0x128] sm:$0xff]  ;;  %v114_v7 = vld [vmem:[#allocation5 + $0x120] sm:$0xff] }
  0x17   :  { %153 = vmatpush.msra.mxu1 %v121_v1  ;;  %v112_v8 = vld [vmem:[#allocation5 + $0x110] sm:$0xff]  ;;  %v111_v9 = vld [vmem:[#allocation5 + $0x108] sm:$0xff]  ;;  %v109_v10 = vld [vmem:[#allocation5 + $0xf8] sm:$0xff] }
  0x18   :  { %133 = vmatpush.msra.mxu0 %v120_v3  ;;  %v108_v11 = vld [vmem:[#allocation5 + $0xf0] sm:$0xff]  ;;  %v106_v12 = vld [vmem:[#allocation5 + $0xe0] sm:$0xff]  ;;  %v105_v13 = vld [vmem:[#allocation5 + $0xd8] sm:$0xff] }
  0x19   :  { %154 = vmatpush.msra.mxu1 %v118_v4  ;;  %v125_v14 = vld [vmem:[#allocation5 + $0x178] sm:$0xff]  ;;  %v122_v15 = vld [vmem:[#allocation5 + $0x160] sm:$0xff]  ;;  %v103_v16 = vld [vmem:[#allocation5 + $0xc8] sm:$0xff] }
  0x1a   :  { %134 = vmatpush.msra.mxu0 %v117_v5  ;;  %v102_v17 = vld [vmem:[#allocation5 + $0xc0] sm:$0xff]  ;;  %172 = vmatpush.msra.mxu2 %v125_v14  ;;  %v119_v18 = vld [vmem:[#allocation5 + $0x148] sm:$0xff]  ;;  %v100_v19 = vld [vmem:[#allocation5 + $0xb0] sm:$0xff] }
  0x1b   :  { %155 = vmatpush.msra.mxu1 %v115_v6  ;;  %v99_v20 = vld [vmem:[#allocation5 + $0xa8] sm:$0xff]  ;;  %v116_v21 = vld [vmem:[#allocation5 + $0x130] sm:$0xff]  ;;  %v97_v22 = vld [vmem:[#allocation5 + $0x98] sm:$0xff] }
  0x1c   :  { %135 = vmatpush.msra.mxu0 %v114_v7  ;;  %173 = vmatpush.msra.mxu2 %v122_v15  ;;  %v96_v23 = vld [vmem:[#allocation5 + $0x90] sm:$0xff]  ;;  %v113_v24 = vld [vmem:[#allocation5 + $0x118] sm:$0xff]  ;;  %v94_v25 = vld [vmem:[#allocation5 + $0x80] sm:$0xff] }
  0x1d   :  { %156 = vmatpush.msra.mxu1 %v112_v8  ;;  %v93_v26 = vld [vmem:[#allocation5 + $0x78] sm:$0xff]  ;;  %v110_v27 = vld [vmem:[#allocation5 + $0x100] sm:$0xff]  ;;  %v91_v28 = vld [vmem:[#allocation5 + $0x68] sm:$0xff] }
  0x1e   :  { %136 = vmatpush.msra.mxu0 %v111_v9  ;;  %174 = vmatpush.msra.mxu2 %v119_v18  ;;  %v90_v29 = vld [vmem:[#allocation5 + $0x60] sm:$0xff]  ;;  %v107_v30 = vld [vmem:[#allocation5 + $0xe8] sm:$0xff]  ;;  %v88_v31 = vld [vmem:[#allocation5 + $0x50] sm:$0xff] }
  0x1f   :  { %157 = vmatpush.msra.mxu1 %v109_v10  ;;  %v87_v32 = vld [vmem:[#allocation5 + $0x48] sm:$0xff]  ;;  %v104_v33 = vld [vmem:[#allocation5 + $0xd0] sm:$0xff]  ;;  %v85_v34 = vld [vmem:[#allocation5 + $0x38] sm:$0xff] }
  0x20   :  { %137 = vmatpush.msra.mxu0 %v108_v11  ;;  %175 = vmatpush.msra.mxu2 %v116_v21  ;;  %v84_v35 = vld [vmem:[#allocation5 + $0x30] sm:$0xff]  ;;  %v101_v36 = vld [vmem:[#allocation5 + $0xb8] sm:$0xff]  ;;  %v82_v37 = vld [vmem:[#allocation5 + $0x20] sm:$0xff] }
  0x21   :  { %158 = vmatpush.msra.mxu1 %v106_v12  ;;  %v81_v38 = vld [vmem:[#allocation5 + $0x18] sm:$0xff]  ;;  %v98_v39 = vld [vmem:[#allocation5 + $0xa0] sm:$0xff]  ;;  %v79_v40 = vld [vmem:[#allocation5 + $0x8] sm:$0xff] }
  0x22   :  { %138 = vmatpush.msra.mxu0 %v105_v13  ;;  %176 = vmatpush.msra.mxu2 %v113_v24  ;;  %v78_v41 = vld [vmem:[#allocation5] sm:$0xff]  ;;  %v77_v42 = vld [vmem:[#allocation2] sm:$0xff]  ;;  %v95_v43 = vld [vmem:[#allocation5 + $0x88] sm:$0xff] }
  0x23   :  { %159 = vmatpush.msra.mxu1 %v103_v16  ;;  %v92_v44 = vld [vmem:[#allocation5 + $0x70] sm:$0xff]  ;;  %v89_v45 = vld [vmem:[#allocation5 + $0x58] sm:$0xff]  ;;  %v86_v46 = vld [vmem:[#allocation5 + $0x40] sm:$0xff] }
  0x24   :  { %139 = vmatpush.msra.mxu0 %v102_v17  ;;  %177 = vmatpush.msra.mxu2 %v110_v27  ;;  %v83_v47 = vld [vmem:[#allocation5 + $0x28] sm:$0xff]  ;;  %v80_v48 = vld [vmem:[#allocation5 + $0x10] sm:$0xff]  ;;  %v515_v50 = vld [vmem:[#allocation8] sm:$0xff] }
  0x25   :  { %160 = vmatpush.msra.mxu1 %v100_v19  ;;  %v127_v49 = vld [vmem:[#allocation8 + $0x8] sm:$0xff]  ;;  %v129_v52 = vperm.slane %v515_v50, 0  ;;  %v128_v57 = vld [vmem:[#allocation8 + $0x10] sm:$0xff]  ;;  %v265_v62 = vld [vmem:[#allocation7 + $0xe0] sm:$0xff] }
  0x26   :  { %140 = vmatpush.msra.mxu0 %v99_v20  ;;  %178 = vmatpush.msra.mxu2 %v107_v30  ;;  %v130_v51 = vperm.slane %v127_v49, 0  ;;  %v131_v58 = vperm.slane %v128_v57, 0  ;;  %v267_v61 = vld [vmem:[#allocation7 + $0xf0] sm:$0xff]  ;;  %v261_v0 = vld [vmem:[#allocation7 + $0xc0] sm:$0xff]  ;;  %v268_v15 = vld [vmem:[#allocation7 + $0xf8] sm:$0xff] }
  0x27   :  { %161 = vmatpush.msra.mxu1 %v97_v22  ;;  %v263_v63 = vld [vmem:[#allocation7 + $0xd0] sm:$0xff]  ;;  %v257_v2 = vld [vmem:[#allocation7 + $0xa0] sm:$0xff]  ;;  %v266_v16 = vld [vmem:[#allocation7 + $0xe8] sm:$0xff] }
  0x28   :  { %141 = vmatpush.msra.mxu0 %v96_v23  ;;  %179 = vmatpush.msra.mxu2 %v104_v33  ;;  %v259_v1 = vld [vmem:[#allocation7 + $0xb0] sm:$0xff]  ;;  %v253_v4 = vld [vmem:[#allocation7 + $0x80] sm:$0xff]  ;;  %v264_v17 = vld [vmem:[#allocation7 + $0xd8] sm:$0xff] }
  0x29   :  { %162 = vmatpush.msra.mxu1 %v94_v25  ;;  %v255_v3 = vld [vmem:[#allocation7 + $0x90] sm:$0xff]  ;;  %v249_v6 = vld [vmem:[#allocation7 + $0x60] sm:$0xff]  ;;  %v262_v18 = vld [vmem:[#allocation7 + $0xc8] sm:$0xff] }
  0x2a   :  { %142 = vmatpush.msra.mxu0 %v93_v26  ;;  %180 = vmatpush.msra.mxu2 %v101_v36  ;;  %v251_v5 = vld [vmem:[#allocation7 + $0x70] sm:$0xff]  ;;  %v245_v8 = vld [vmem:[#allocation7 + $0x40] sm:$0xff]  ;;  %v260_v19 = vld [vmem:[#allocation7 + $0xb8] sm:$0xff] }
  0x2b   :  { %163 = vmatpush.msra.mxu1 %v91_v28  ;;  %v247_v7 = vld [vmem:[#allocation7 + $0x50] sm:$0xff]  ;;  %v241_v10 = vld [vmem:[#allocation7 + $0x20] sm:$0xff]  ;;  %v258_v20 = vld [vmem:[#allocation7 + $0xa8] sm:$0xff] }
  0x2c   :  { %143 = vmatpush.msra.mxu0 %v90_v29  ;;  %181 = vmatpush.msra.mxu2 %v98_v39  ;;  %v243_v9 = vld [vmem:[#allocation7 + $0x30] sm:$0xff]  ;;  %v237_v14 = vld [vmem:[#allocation7] sm:$0xff]  ;;  %v256_v21 = vld [vmem:[#allocation7 + $0x98] sm:$0xff] }
  0x2d   :  { %164 = vmatpush.msra.mxu1 %v88_v31  ;;  %v239_v11 = vld [vmem:[#allocation7 + $0x10] sm:$0xff]  ;;  %v254_v22 = vld [vmem:[#allocation7 + $0x88] sm:$0xff]  ;;  %v252_v23 = vld [vmem:[#allocation7 + $0x78] sm:$0xff] }
  0x2e   :  { %144 = vmatpush.msra.mxu0 %v87_v32  ;;  %182 = vmatpush.msra.mxu2 %v95_v43  ;;  %v250_v24 = vld [vmem:[#allocation7 + $0x68] sm:$0xff]  ;;  %v248_v25 = vld [vmem:[#allocation7 + $0x58] sm:$0xff]  ;;  %v269_v32 = vperm.slane %v515_v50, 1 }
  0x2f   :  { %165 = vmatpush.msra.mxu1 %v85_v34  ;;  %v246_v26 = vld [vmem:[#allocation7 + $0x48] sm:$0xff]  ;;  %v244_v27 = vld [vmem:[#allocation7 + $0x38] sm:$0xff] }
  0x30   :  { %145 = vmatpush.msra.mxu0 %v84_v35  ;;  %183 = vmatpush.msra.mxu2 %v92_v44  ;;  %v242_v28 = vld [vmem:[#allocation7 + $0x28] sm:$0xff]  ;;  %v240_v30 = vld [vmem:[#allocation7 + $0x18] sm:$0xff]  ;;  %v290_v35 = vperm.slane %v515_v50, 2 }
  0x31   :  { %166 = vmatpush.msra.mxu1 %v82_v37  ;;  %v238_v31 = vld [vmem:[#allocation7 + $0x8] sm:$0xff] }
  0x32   :  { %146 = vmatpush.msra.mxu0 %v81_v38  ;;  %184 = vmatpush.msra.mxu2 %v89_v45 }
  0x33   :  { %167 = vmatpush.msra.mxu1 %v79_v40 }
  0x34   :  { %147 = vmatpush.msra.mxu0 %v78_v41  ;;  %168 = vmatmul.f32.vlgmr.msra.gmra.mxu1 %v77_v42 }
  0x35   :  { %148 = vmatmul.f32.vlgmr.msra.gmra.mxu0 %v77_v42  ;;  %185 = vmatpush.msra.mxu2 %v86_v46 }
  0x36   :  { %291 = vmatpush.msrb.mxu0 %v268_v15 }
  0x37   :  { %186 = vmatpush.msra.mxu2 %v83_v47 }
  0x38   :  { %292 = vmatpush.msrb.mxu0 %v266_v16 }
  0x39   :  { %187 = vmatpush.msra.mxu2 %v80_v48 }
  0x3a   :  { %188 = vmatmul.f32.vlgmr.msra.gmra.mxu2 %v77_v42  ;;  %293 = vmatpush.msrb.mxu0 %v264_v17 }
  0x3c   :  { %294 = vmatpush.msrb.mxu0 %v262_v18 }
  0x3e   :  { %295 = vmatpush.msrb.mxu0 %v260_v19 }
  0x40   :  { %296 = vmatpush.msrb.mxu0 %v258_v20 }
  0x42   :  { %297 = vmatpush.msrb.mxu0 %v256_v21 }
  0x44   :  { %298 = vmatpush.msrb.mxu0 %v254_v22 }
  0x46   :  { %299 = vmatpush.msrb.mxu0 %v252_v23 }
  0x48   :  { %300 = vmatpush.msrb.mxu0 %v250_v24 }
  0x4a   :  { %301 = vmatpush.msrb.mxu0 %v248_v25 }
  0x4c   :  { %302 = vmatpush.msrb.mxu0 %v246_v26 }
  0x4e   :  { %303 = vmatpush.msrb.mxu0 %v244_v27 }
  0x50   :  { %304 = vmatpush.msrb.mxu0 %v242_v28 }
  0x52   :  { %305 = vmatpush.msrb.mxu0 %v240_v30 }
  0x54   :  { %306 = vmatpush.msrb.mxu0 %v238_v31 }
  0xb1   :  { %v169_v53 = vpop.f32.mrf.mxu1 }
  0xb2   :  { %v149_v54 = vpop.f32.mrf.mxu0  ;;  %v170_v55 = vadd.f32 %v169_v53, %v130_v51 }
  0xb3   :  { %v150_v56 = vadd.f32 %v149_v54, %v129_v52 }
  0xb4   :  { %207 = vmatpush.xpose.msra.mxu3 %v170_v55 }
  0xb7   :  { %208 = vmatmul.f32.vlgmr.msra.gmra.mxu3 %v150_v56 }
  0xbd   :  { %v189_v59 = vpop.f32.mrf.mxu2 }
  0xbe   :  { %v190_v60 = vadd.f32 %v189_v59, %v131_v58 }
  0xc0   :  { %232 = vmatpush.msrb.mxu3 %v190_v60 }
  0xc2   :  { %270 = vmatpush.msra.mxu3 %v267_v61 }
  0xc4   :  { %271 = vmatpush.msra.mxu3 %v265_v62 }
  0xc6   :  { %272 = vmatpush.msra.mxu3 %v263_v63 }
  0xc8   :  { %273 = vmatpush.msra.mxu3 %v261_v0 }
  0xca   :  { %274 = vmatpush.msra.mxu3 %v259_v1 }
  0xcc   :  { %275 = vmatpush.msra.mxu3 %v257_v2 }
  0xce   :  { %276 = vmatpush.msra.mxu3 %v255_v3 }
  0xd0   :  { %277 = vmatpush.msra.mxu3 %v253_v4 }
  0xd2   :  { %278 = vmatpush.msra.mxu3 %v251_v5 }
  0xd4   :  { %279 = vmatpush.msra.mxu3 %v249_v6 }
  0xd6   :  { %280 = vmatpush.msra.mxu3 %v247_v7 }
  0xd8   :  { %281 = vmatpush.msra.mxu3 %v245_v8 }
  0xda   :  { %282 = vmatpush.msra.mxu3 %v243_v9 }
  0xdc   :  { %283 = vmatpush.msra.mxu3 %v241_v10 }
  0xde   :  { %284 = vmatpush.msra.mxu3 %v239_v11 }
  0xe0   :  { %285 = vmatpush.msra.mxu3 %v237_v14 }
 0x13a   :  { %v209_v12 = vpop.f32.mrf.mxu3 }
 0x13b   :  { %v212_v13 = vmul.f32 0.17677669, %v209_v12 }
 0x13d   :  { %331 = vmatmul.msk.f32.vlgmr.msrb.gmra.mxu3 %vm213_vm0, %v212_v13 }
 0x1c0   :  { %v234_v29 = vpop.f32.mrf.mxu3 }
 0x1c1   :  { %286 = vmatmul.f32.vlgmr.msra.gmra.mxu3 %v234_v29 }
 0x244   :  { %v287_v33 = vpop.f32.mrf.mxu3 }
 0x245   :  { %v288_v34 = vadd.f32 %v287_v33, %v269_v32 }
 0x247   :  { %307 = vmatmul.f32.vlgmr.msrb.gmra.mxu0 %v288_v34 }
 0x2c4   :  { %v308_v36 = vpop.f32.mrf.mxu0 }
 0x2c5   :  { %v309_v37 = vadd.f32 %v308_v36, %v290_v35 }
 0x2c7   :  { %311 = vst [vmem:[#allocation10] sm:$0xff] %v309_v37 }
 0x2c8   :  { %322 = dma.vmem_to_hbm [thread:$0]  %s318_s3, 128, %s320_s13, [#allocation4]  }
 0x2c9   :  { %467 = dma.done.wait [#allocation4], 128  }
 0x2ca   :  { %468 = vsyncadd [#allocation4], 4294967168 }
 0x2cb   :  { %327 = vsyncpa [#allocation3], 1 }
 0x2cc   :  { %328 = vsyncpa [#allocation6], 1 }
 0x2cd   :  { %329 = vsyncpa [#allocation9], 1 }
 0x2ce   :  { %330 = vsyncpa [#allocation4], 1 }

</bundles_post_ra>
